<compile_context>
chip_gen: v7x
topology: tpu7x:2x2x1
jax: 0.10.0
libtpu: 0.0.40
codegen_flags: <defaults>
</compile_context>

<pallas_src>
import functools

import jax
import jax.numpy as jnp
import numpy as np
from jax.experimental import pallas as pl
from jax.experimental.pallas import tpu as pltpu


def _make_pe_table(embed: int, pad_size: int) -> jnp.ndarray:
    """Matches the torch code: pe[pos, i] = pos / 10000**((i//2)*2/embed); sin/cos interleave."""
    pos = np.arange(pad_size, dtype=np.float64)[:, None]             # (P, 1)
    i = np.arange(embed, dtype=np.float64)[None, :]                   # (1, E)
    angle = pos / np.power(10000.0, (np.floor(i / 2.0) * 2.0) / embed)
    pe = np.empty((pad_size, embed), dtype=np.float64)
    pe[:, 0::2] = np.sin(angle[:, 0::2])
    pe[:, 1::2] = np.cos(angle[:, 1::2])
    return jnp.asarray(pe, dtype=jnp.float32)


def _pos_enc_kernel(x_ref, pe_ref, o_ref):
    # x_ref: (bb, L), pe_ref: (1, L) -> broadcast add over rows.
    o_ref[...] = (x_ref[...] + pe_ref[...]).astype(o_ref.dtype)


def _pos_enc_dropout_kernel(x_ref, pe_ref, bits_ref, o_ref, *, threshold: int, inv_keep: float):
    # Inverted dropout: keep with prob (1-p); kept values scaled by 1/(1-p).
    out = x_ref[...] + pe_ref[...]
    keep = bits_ref[...] >= jnp.int32(threshold)          # bits uniform in [0, 2^31)
    o_ref[...] = jnp.where(keep, out * jnp.float32(inv_keep),
                           jnp.zeros_like(out)).astype(o_ref.dtype)


def _row_block(n_rows: int, row_bytes: int, target_bytes: int = 1 << 20) -> int:
    """Pick a row-block size: whole batch if small, else a ~1 MiB multiple-of-8 row block."""
    if n_rows <= 8 or n_rows * row_bytes <= 2 * target_bytes:
        return n_rows
    bb = (target_bytes // max(row_bytes, 1)) // 8 * 8
    return int(max(8, min(n_rows, bb)))


def positional_encoding(x: jnp.ndarray, pe: jnp.ndarray, *, dropout_p: float = 0.0,
                        key=None) -> jnp.ndarray:
    """x: (B, P, E), pe: (P, E). Returns dropout(x + pe) with inverted-dropout scaling."""
    B, P, E = x.shape
    assert pe.shape == (P, E)
    L = P * E

    # Lane-dense flattened views (pure layout plumbing; reshapes are free in the wrapper).
    x2 = x.reshape(B, L)
    pe2 = pe.reshape(1, L).astype(x.dtype)

    bb = _row_block(B, L * x2.dtype.itemsize)
    grid = (pl.cdiv(B, bb),)

    x_spec = pl.BlockSpec((bb, L), lambda i: (i, 0))
    pe_spec = pl.BlockSpec((1, L), lambda i: (0, 0))      # constant index -> stays resident
    out_spec = pl.BlockSpec((bb, L), lambda i: (i, 0))
    cparams = pltpu.CompilerParams(dimension_semantics=("parallel",))

    if dropout_p > 0.0:
        if key is None:
            key = jax.random.PRNGKey(0)
        # 31 random bits per element, uniform in [0, 2^31), as plain int32.
        bits = (jax.random.bits(key, (B, L), dtype=jnp.uint32) >> 1).astype(jnp.int32)
        threshold = min(int(round(float(dropout_p) * (1 << 31))), (1 << 31) - 1)
        inv_keep = 1.0 / (1.0 - float(dropout_p))
        kernel = functools.partial(_pos_enc_dropout_kernel,
                                   threshold=threshold, inv_keep=inv_keep)
        bits_spec = pl.BlockSpec((bb, L), lambda i: (i, 0))
        out2 = pl.pallas_call(
            kernel,
            out_shape=jax.ShapeDtypeStruct((B, L), x.dtype),
            grid=grid,
            in_specs=[x_spec, pe_spec, bits_spec],
            out_specs=out_spec,
            compiler_params=cparams,
        )(x2, pe2, bits)
    else:
        out2 = pl.pallas_call(
            _pos_enc_kernel,
            out_shape=jax.ShapeDtypeStruct((B, L), x.dtype),
            grid=grid,
            in_specs=[x_spec, pe_spec],
            out_specs=out_spec,
            compiler_params=cparams,
        )(x2, pe2)

    return out2.reshape(B, P, E)


if __name__ == "__main__":
    # Small shapes consistent with the module: batch=2, pad_size (seq)=8, embed=32.
    B, P, E = 2, 8, 32
    dropout = 0.1

    key = jax.random.PRNGKey(0)
    kx, kd = jax.random.split(key)
    x = jax.random.normal(kx, (B, P, E), dtype=jnp.float32)
    pe = _make_pe_table(embed=E, pad_size=P)

    # 1) Eval-mode check (dropout disabled): out == x + pe (exact semantics of the module in eval).
    out_eval = jax.block_until_ready(positional_encoding(x, pe, dropout_p=0.0))
    ref = x + pe[None, :, :]
    np.testing.assert_allclose(np.asarray(out_eval), np.asarray(ref), rtol=1e-6, atol=1e-6)

    # 2) Training-mode dropout: every output element is either 0 or (x+pe)/(1-p).
    out_train = jax.block_until_ready(positional_encoding(x, pe, dropout_p=dropout, key=kd))
    assert out_train.shape == (B, P, E)
    assert bool(jnp.all(jnp.isfinite(out_train)))
    scaled_ref = ref / (1.0 - dropout)
    structure_ok = jnp.isclose(out_train, 0.0, atol=1e-7) | jnp.isclose(
        out_train, scaled_ref, rtol=1e-5, atol=1e-5)
    assert bool(jnp.all(structure_ok))

    print("KERNEL_OK")
</pallas_src>

<mosaic_0001>
module attributes {stable_mosaic.version = 11 : i64} {
  func.func @_pos_enc_kernel(%arg0: i32, %arg1: memref<2x256xf32, #tpu.memory_space<vmem>>, %arg2: memref<1x256xf32, #tpu.memory_space<vmem>>, %arg3: memref<2x256xf32, #tpu.memory_space<vmem>>) attributes {dimension_semantics = [#tpu.dimension_semantics<parallel>], iteration_bounds = array<i64: 1>, scalar_prefetch = 0 : i64, scratch_operands = 0 : i64, tpu.core_type = #tpu.core_type<tc>, window_params = [{transform_indices = @transform_0, window_bounds = array<i64: 2, 256>}, {pipeline_mode = #tpu.pipeline_mode<synchronous>, transform_indices = @transform_1, window_bounds = array<i64: 1, 256>}, {transform_indices = @transform_2, window_bounds = array<i64: 2, 256>}]} {
    %c0 = arith.constant 0 : index
    %c0_0 = arith.constant 0 : index
    %0 = vector.load %arg1[%c0, %c0_0] : memref<2x256xf32, #tpu.memory_space<vmem>>, vector<2x256xf32>
    %c0_1 = arith.constant 0 : index
    %c0_2 = arith.constant 0 : index
    %1 = vector.load %arg2[%c0_1, %c0_2] : memref<1x256xf32, #tpu.memory_space<vmem>>, vector<1x256xf32>
    %2 = vector.broadcast %1 : vector<1x256xf32> to vector<2x256xf32>
    %3 = arith.addf %0, %2 : vector<2x256xf32>
    %c0_3 = arith.constant 0 : index
    %c0_4 = arith.constant 0 : index
    %4 = vector.load %arg3[%c0_3, %c0_4] : memref<2x256xf32, #tpu.memory_space<vmem>>, vector<2x256xf32>
    tpu.vector_store %arg3[%c0_3, %c0_4], %3 {strides = array<i32>} : memref<2x256xf32, #tpu.memory_space<vmem>>, vector<2x256xf32>,
    return
  }
  func.func @transform_0(%arg0: i32) -> (i32, i32) {
    %c0_i32 = arith.constant 0 : i32
    %c0_i32_0 = arith.constant 0 : i32
    return %arg0, %c0_i32 : i32, i32
  }
  func.func @transform_1(%arg0: i32) -> (i32, i32) {
    %c0_i32 = arith.constant 0 : i32
    %c0_i32_0 = arith.constant 0 : i32
    %c0_i32_1 = arith.constant 0 : i32
    return %c0_i32, %c0_i32_0 : i32, i32
  }
  func.func @transform_2(%arg0: i32) -> (i32, i32) {
    %c0_i32 = arith.constant 0 : i32
    %c0_i32_0 = arith.constant 0 : i32
    return %arg0, %c0_i32 : i32, i32
  }
}

</mosaic_0001>

<bundles_post_ra>
// kernel: tpu_custom_call.1
= control target key start
LH: loop header
LB: loop body
LE: loop exit
PB: predicated region body
PF: predicated region fallthrough
CT: control target
= control target key end

     0   :  { %7 = vsyncpa [#allocation3], 0  ;;  %s157_s0 = inlined_call_operand.hbm [shape: f32[2,256], index: 0, kind: input, shape index: {}]   ;;  %s158_s1 = inlined_call_operand.vmem [shape: f32[1,256], index: 1, kind: input, shape index: {}]   ;;  %s159_s2 = inlined_call_operand.hbm [shape: f32[2,256], index: 2, kind: output, shape index: {}]  }
   0x1   :  { %8 = vsyncpa [#allocation4], 0  ;;  %s112_s9 = smov [#allocation2]   ;;  %s64_s13 = scalar_lea.hbm %s157_s0, 64 }
   0x2   :  { %s15_s10 = sshll.u32 %s112_s9, 4  ;;  %p65_p0 = scmp.ne.s32.totalorder %s157_s0, %s64_s13  ;;  %s16_s10 = int_to_ptr.vmem [resolvable:$true] %s15_s10 }
   0x3   :  { %p68_p1 = scmp.lt.u32.totalorder %s64_s13, %s157_s0 }
   0x5   :  { %p70_p2 = pnand %p68_p1, %p65_p0 }
   0x7   :  { %73 = shalt.err (!%p70_p2)
}
   0x8   :  { %s74_s18 = scalar_lea.vmem %s16_s10, 64  ;;  %p79_p4 = scmp.lt.s32.totalorder %s16_s10, %s16_s10 }
   0x9   :  { %p75_p3 = scmp.ne.s32.totalorder %s16_s10, %s74_s18  ;;  %p80_p5 = scmp.lt.s32.totalorder %s74_s18, %s74_s18 }
   0xb   :  { %p81_p6 = por %p80_p5, %p79_p4 }
   0xd   :  { %p82_p7 = pnand %p81_p6, %p75_p3 }
   0xf   :  { %85 = shalt.err (!%p82_p7)
}
  0x10   :  { %18 = dma.hbm_to_vmem [thread:$0]  %s157_s0, 64, %s16_s10, [#allocation3]  }
  0x11   :  { %108 = dma.done.wait [#allocation3], 64  }
  0x12   :  { %109 = vsyncadd [#allocation3], 4294967232  ;;  %v27_v0 = vlaneseq  ;;  %v113_v1 = vmov 1983009808   ;;  %v25_v7 = vld [vmem:[%s158_s1] sm:$0x3] }
  0x13   :  { %v37_v2 = vunpack.c.l.s4 %v113_v1  ;;  %v24_v12 = vld [vmem:[#allocation2] sm:$0xf]  ;;  %s114_s23 = smov [#allocation5]  }
  0x14   :  { %v28_v3 = vshrl.u32 %v27_v0, 7  ;;  %s52_s0 = sshll.u32 %s114_s23, 4  ;;  %s53_s0 = int_to_ptr.vmem [resolvable:$true] %s52_s0 }
  0x15   :  { %v38_v6 = vunpack.c.0.s8 %v37_v2  ;;  %s86_s24 = scalar_lea.vmem %s53_s0, 64  ;;  %p91_p9 = scmp.lt.s32.totalorder %s53_s0, %s53_s0 }
  0x16   :  { %v29_v4 = vsub.s32 0, %v28_v3  ;;  %v33_v5 = vsub.s32 1, %v28_v3  ;;  %p87_p8 = scmp.ne.s32.totalorder %s53_s0, %s86_s24  ;;  %p92_p10 = scmp.lt.s32.totalorder %s86_s24, %s86_s24 }
  0x17   :  { %v41_v10 = vsub.s32 %v38_v6, %v28_v3 }
  0x18   :  { %v30_v8 = vrot.slane %v25_v7, %v29_v4  ;;  %v34_v9 = vrot.slane %v25_v7, %v33_v5  ;;  %p93_p11 = por %p92_p10, %p91_p9 }
  0x1a   :  { %v35_v11 = vcombine.low %v30_v8, %v34_v9  ;;  %p94_p12 = pnand %p93_p11, %p87_p8 }
  0x1c   :  { %v42_v13 = vrot.slane %v35_v11, %v41_v10 }
  0x1e   :  { %v44_v14 = vadd.f32 %v42_v13, %v24_v12 }
  0x20   :  { %45 = vst [vmem:[#allocation5] sm:$0xf] %v44_v14 }
  0x21   :  { %97 = shalt.err (!%p94_p12)
}
  0x22   :  { %s98_s26 = scalar_lea.hbm %s159_s2, 64 }
  0x23   :  { %p99_p13 = scmp.ne.s32.totalorder %s159_s2, %s98_s26  ;;  %p102_p0 = scmp.lt.u32.totalorder %s98_s26, %s159_s2 }
  0x25   :  { %p104_p1 = pnand %p102_p0, %p99_p13 }
  0x27   :  { %107 = shalt.err (!%p104_p1)
}
  0x28   :  { %55 = dma.vmem_to_hbm [thread:$0]  %s53_s0, 64, %s159_s2, [#allocation4]  }
  0x29   :  { %110 = dma.done.wait [#allocation4], 64  }
  0x2a   :  { %111 = vsyncadd [#allocation4], 4294967232 }
  0x2b   :  { %59 = vsyncpa [#allocation3], 1 }
  0x2c   :  { %60 = vsyncpa [#allocation4], 1 }

</bundles_post_ra>
